<compile_context>
chip_gen: v7x
topology: tpu7x:2x2x1
jax: 0.10.0
libtpu: 0.0.40
codegen_flags: <defaults>
</compile_context>

<pallas_src>
import functools

import jax
import jax.numpy as jnp
from jax.experimental import pallas as pl
from jax.experimental.pallas import tpu as pltpu


def _round_up(x, m):
    return ((x + m - 1) // m) * m


def _vmem_limit_bytes():
    """Generation-aware scoped-VMEM limit (v7x: 64 MiB, v5e/v6e: 128 MiB)."""
    cap = 64 << 20
    try:
        info = pltpu.get_tpu_info()
        cap = int(getattr(info, "vmem_capacity_bytes", cap)) or cap
    except Exception:
        pass
    return max(32 << 20, min(cap * 3 // 4, 100 << 20))


def _pick_row_block(n_rows, n_heads, hidden, out_p, vmem_limit):
    """Query-row tile from a VMEM budget that counts the real live set."""
    budget = int(vmem_limit * 0.7)
    nk = _round_up(n_rows, 128)                # keys after padding (upper bound)
    resident = (2 * nk * out_p * 4             # out-layer key slab (2 buffers)
                + 2 * nk * hidden * 2          # per-head bf16 key block (2 buf)
                + 2 * n_heads * nk * 4         # hoisted f_k rows (resident)
                + 2 * n_heads * hidden * out_p * 4
                + (1 << 20))
    per_row = (6 * nk * 4                      # e / p / att / mask / bf16 att
               + 2 * nk                        # int8 adjacency rows (2 buffers)
               + 6 * out_p * 4                 # wh2 / hp2 blocks + accumulator
               + 64)
    avail = max(budget - resident, per_row * 8)
    tq = avail // per_row
    if n_rows > 256:
        # >= 2 row tiles so the "parallel" axis feeds both TensorCores
        # (megacore / v7x), and never a [n, n] softmax monolith.
        tq = min(tq, _round_up((n_rows + 1) // 2, 128))
    if n_rows <= tq:
        return _round_up(max(n_rows, 1), 8)
    return max(128, (min(tq, 4096) // 128) * 128)


# ----------------------------------------------------------------------------
# Kernel A: head-major projection + hoisted per-head score terms.
#   per head h: Wh_h = x @ W_h  (stored head-major, bf16 key side)
#               f_q  = Wh_h @ a1_h,  f_k = Wh_h @ a2_h
# ----------------------------------------------------------------------------
def _project_kernel(x_ref, w_ref, a12_ref, whk_ref, fq_ref, fk_ref, *, n_heads):
    x = x_ref[...]                                   # [TQ, in_dim]
    fqs, fks = [], []
    for h in range(n_heads):                         # static: only small temps
        wh = jnp.dot(x, w_ref[h], preferred_element_type=jnp.float32)
        whk_ref[h] = wh.astype(whk_ref.dtype)        # pre-cast keys to bf16 once
        f = jnp.dot(wh, a12_ref[h], preferred_element_type=jnp.float32)  # [TQ,2]
        fqs.append(f[:, 0:1])
        fks.append(f[:, 1:2])
    fq_ref[...] = jnp.concatenate(fqs, axis=1)       # [TQ, H]
    fk_ref[...] = jnp.concatenate(fks, axis=1)       # [TQ, H]


# ----------------------------------------------------------------------------
# Kernel B: one (row tile, head) step of layer-1 attention, ELU, and per-head
# accumulation into the fused out-layer projection
#     acc += elu(softmax(mask(leakyrelu(f_q + f_k))) @ Wh_h) @ W_out[h]
# which equals concat-then-matmul without the lane-repacking concat.
# ----------------------------------------------------------------------------
def _heads_kernel(fq_ref, fk_ref, adj_ref, whk_ref, wout_ref, a12o_ref,
                  o_ref, f2_ref, acc_ref, *, alpha):
    h = pl.program_id(1)
    last = pl.num_programs(1) - 1

    @pl.when(h == 0)
    def _():
        acc_ref[...] = jnp.zeros_like(acc_ref)

    # This head's hoisted score terms (no per-head matmuls / transposes here).
    fq = fq_ref[...]                                             # [TQ, H]
    hsel = jax.lax.broadcasted_iota(jnp.int32, fq.shape, 1) == h
    fq_h = jnp.sum(jnp.where(hsel, fq, 0.0), axis=1, keepdims=True)   # [TQ, 1]
    fk_h = fk_ref[pl.ds(h, 1), :]                                # [1, N]

    e = fq_h + fk_h                                              # [TQ, N]
    e = jnp.where(e > 0, e, alpha * e)                           # LeakyReLU
    # Rows with no unmasked neighbours degrade to a uniform softmax (the -9e15
    # fill cancels under the max subtraction) — same behaviour as the torch
    # reference; self-loops in adj are assumed.
    e = jnp.where(adj_ref[...] > 0, e, jnp.float32(-9e15))
    e = e - jnp.max(e, axis=-1, keepdims=True)
    p = jnp.exp(e)                                               # f32 softmax
    inv = pl.reciprocal(jnp.sum(p, axis=-1, keepdims=True), approx=True)
    att = (p * inv).astype(jnp.bfloat16)

    # Dominant aggregation: bf16 MXU operands, f32 accumulation.
    hp = jnp.dot(att, whk_ref[...], preferred_element_type=jnp.float32)
    hp = jnp.where(hp > 0, hp, jnp.expm1(jnp.minimum(hp, 0.0)))  # ELU
    acc_ref[...] += jnp.dot(hp, wout_ref[...],
                            preferred_element_type=jnp.float32)

    @pl.when(h == last)
    def _():
        acc = acc_ref[...]
        o_ref[...] = acc                                         # layer-2 feats
        f2_ref[...] = jnp.dot(acc, a12o_ref[...],                # layer-2 f_q|f_k
                              preferred_element_type=jnp.float32)


# ----------------------------------------------------------------------------
# Kernel C: output attention layer (concat=False -> no ELU), row-tiled,
# using the f_q / f_k precomputed by kernel B's epilogue.
# ----------------------------------------------------------------------------
def _out_attn_kernel(fq_ref, fk_ref, adj_ref, whk_ref, o_ref, *, alpha):
    e = fq_ref[...] + fk_ref[...]                                # [TQ, N]
    e = jnp.where(e > 0, e, alpha * e)
    e = jnp.where(adj_ref[...] > 0, e, jnp.float32(-9e15))
    e = e - jnp.max(e, axis=-1, keepdims=True)
    p = jnp.exp(e)
    inv = pl.reciprocal(jnp.sum(p, axis=-1, keepdims=True), approx=True)
    o_ref[...] = jnp.dot(p * inv, whk_ref[...],
                         preferred_element_type=jnp.float32)


# ----------------------------------------------------------------------------
# Kernel D: BatchNorm1d (training-mode batch statistics, eps) + tanh.
# TODO(synk): running-mean/var (momentum) buffer updates of nn.BatchNorm1d are
# not modelled; training-mode batch statistics are used for normalisation.
# ----------------------------------------------------------------------------
def _bn_tanh_kernel(hp_ref, gamma_ref, beta_ref, o_ref, *, eps):
    hp = hp_ref[...]
    mean = jnp.mean(hp, axis=0, keepdims=True)
    var = jnp.mean(jnp.square(hp - mean), axis=0, keepdims=True)  # biased var
    y = (hp - mean) * jax.lax.rsqrt(var + eps)
    o_ref[...] = jnp.tanh(y * gamma_ref[...] + beta_ref[...])


# ----------------------------------------------------------------------------
# Wrapper
# ----------------------------------------------------------------------------
def gat_forward(x, adj, params, *, alpha, return_pre_bn=False):
    n, in_dim = x.shape
    w_heads = params["w_heads"]        # [H, in_dim, hidden]
    a1_heads = params["a1_heads"]      # [H, 1, hidden]
    a2_heads = params["a2_heads"]      # [H, 1, hidden]
    w_out = params["w_out"]            # [hidden*H, out_dim]
    a1_out = params["a1_out"]          # [1, out_dim]
    a2_out = params["a2_out"]          # [1, out_dim]
    gamma = params["gamma"]            # [1, out_dim]
    beta = params["beta"]              # [1, out_dim]

    n_heads, _, hidden = w_heads.shape
    out_dim = w_out.shape[1]
    out_p = _round_up(out_dim, 128)    # lane-dense intermediate width

    vmem_limit = _vmem_limit_bytes()
    tq = _pick_row_block(n, n_heads, hidden, out_p, vmem_limit)
    n_pad = _round_up(n, tq)
    nrb = n_pad // tq

    # One-time parameter repacking / padding (weight-sized, off the hot path).
    a12_heads = jnp.concatenate(
        [jnp.transpose(a1_heads, (0, 2, 1)),
         jnp.transpose(a2_heads, (0, 2, 1))], axis=-1)           # [H, hidden, 2]
    w_out_hm = jnp.pad(w_out.reshape(n_heads, hidden, out_dim),
                       ((0, 0), (0, 0), (0, out_p - out_dim)))   # [H, hidden, Op]
    a12_out = jnp.pad(jnp.concatenate([a1_out.T, a2_out.T], axis=-1),
                      ((0, out_p - out_dim), (0, 0)))            # [Op, 2]
    x_p = jnp.pad(x, ((0, n_pad - n), (0, 0)))
    adj_mask = jnp.pad((adj > 0).astype(jnp.int8),
                       ((0, n_pad - n), (0, n_pad - n)))         # 4x less HBM

    par1 = pltpu.CompilerParams(dimension_semantics=("parallel",),
                                vmem_limit_bytes=vmem_limit)
    par2 = pltpu.CompilerParams(dimension_semantics=("parallel", "arbitrary"),
                                vmem_limit_bytes=vmem_limit)

    # ---- kernel A: head-major projection + hoisted score terms -------------
    whk, fq_nh, fk_nh = pl.pallas_call(
        functools.partial(_project_kernel, n_heads=n_heads),
        out_shape=(jax.ShapeDtypeStruct((n_heads, n_pad, hidden), jnp.bfloat16),
                   jax.ShapeDtypeStruct((n_pad, n_heads), jnp.float32),
                   jax.ShapeDtypeStruct((n_pad, n_heads), jnp.float32)),
        grid=(nrb,),
        in_specs=[pl.BlockSpec((tq, in_dim), lambda i: (i, 0)),
                  pl.BlockSpec((n_heads, in_dim, hidden), lambda i: (0, 0, 0)),
                  pl.BlockSpec((n_heads, hidden, 2), lambda i: (0, 0, 0))],
        out_specs=(pl.BlockSpec((n_heads, tq, hidden), lambda i: (0, i, 0)),
                   pl.BlockSpec((tq, n_heads), lambda i: (i, 0)),
                   pl.BlockSpec((tq, n_heads), lambda i: (i, 0))),
        compiler_params=par1,
    )(x_p, w_heads, a12_heads)

    fk_hm = fk_nh.T                    # [H, n_pad]; tiny one-time transpose

    # ---- kernel B: heads attention + ELU + fused out-layer projection ------
    wh2, f2 = pl.pallas_call(
        functools.partial(_heads_kernel, alpha=alpha),
        out_shape=(jax.ShapeDtypeStruct((n_pad, out_p), jnp.float32),
                   jax.ShapeDtypeStruct((n_pad, 2), jnp.float32)),
        grid=(nrb, n_heads),
        in_specs=[
            pl.BlockSpec((tq, n_heads), lambda i, h: (i, 0)),          # f_q tile
            pl.BlockSpec((n_heads, n_pad), lambda i, h: (0, 0)),       # f_k (tiny, resident)
            pl.BlockSpec((tq, n_pad), lambda i, h: (i, 0)),            # adj tile
            pl.BlockSpec((None, n_pad, hidden), lambda i, h: (h, 0, 0)),  # Wh_h keys (bf16)
            pl.BlockSpec((None, hidden, out_p), lambda i, h: (h, 0, 0)),  # W_out[h]
            pl.BlockSpec((out_p, 2), lambda i, h: (0, 0)),             # a_out
        ],
        out_specs=(pl.BlockSpec((tq, out_p), lambda i, h: (i, 0)),
                   pl.BlockSpec((tq, 2), lambda i, h: (i, 0))),
        scratch_shapes=[pltpu.VMEM((tq, out_p), jnp.float32)],
        compiler_params=par2,
    )(fq_nh, fk_hm, adj_mask, whk, w_out_hm, a12_out)

    fq2 = f2[:, 0:1]                   # [n_pad, 1]
    fk2 = f2[:, 1:2].T                 # [1, n_pad]; tiny one-time transpose

    # ---- kernel C: output attention layer (no ELU) --------------------------
    hp2_pad = pl.pallas_call(
        functools.partial(_out_attn_kernel, alpha=alpha),
        out_shape=jax.ShapeDtypeStruct((n_pad, out_p), jnp.float32),
        grid=(nrb,),
        in_specs=[pl.BlockSpec((tq, 1), lambda i: (i, 0)),
                  pl.BlockSpec((1, n_pad), lambda i: (0, 0)),
                  pl.BlockSpec((tq, n_pad), lambda i: (i, 0)),
                  pl.BlockSpec((n_pad, out_p), lambda i: (0, 0))],
        out_specs=pl.BlockSpec((tq, out_p), lambda i: (i, 0)),
        compiler_params=par1,
    )(fq2, fk2, adj_mask, wh2)

    hp2 = hp2_pad[:n, :out_dim]        # strip row / lane padding before BN

    # ---- kernel D: BatchNorm1d (batch stats) + tanh -------------------------
    out = pl.pallas_call(
        functools.partial(_bn_tanh_kernel, eps=1e-3),
        out_shape=jax.ShapeDtypeStruct((n, out_dim), jnp.float32),
        grid=(1,),
        in_specs=[pl.BlockSpec((n, out_dim), lambda i: (0, 0)),
                  pl.BlockSpec((1, out_dim), lambda i: (0, 0)),
                  pl.BlockSpec((1, out_dim), lambda i: (0, 0))],
        out_specs=pl.BlockSpec((n, out_dim), lambda i: (0, 0)),
        compiler_params=pltpu.CompilerParams(vmem_limit_bytes=vmem_limit),
    )(hp2, gamma, beta)

    if return_pre_bn:
        return out, hp2
    return out


# ----------------------------------------------------------------------------
# Pure-JAX f32 reference (same math) for the sanity check.
# ----------------------------------------------------------------------------
def gat_reference(x, adj, params, *, alpha):
    def layer(h, w, a1, a2, concat):
        wh = h @ w
        e = (wh @ a1.T) + (wh @ a2.T).T
        e = jnp.where(e > 0, e, alpha * e)
        e = jnp.where(adj > 0, e, -9e15)
        att = jax.nn.softmax(e, axis=1)
        hp = att @ wh
        return jax.nn.elu(hp) if concat else hp

    heads = [layer(x, params["w_heads"][i], params["a1_heads"][i],
                   params["a2_heads"][i], True)
             for i in range(params["w_heads"].shape[0])]
    xc = jnp.concatenate(heads, axis=1)
    y = layer(xc, params["w_out"], params["a1_out"], params["a2_out"], False)
    mean = jnp.mean(y, axis=0, keepdims=True)
    var = jnp.mean((y - mean) ** 2, axis=0, keepdims=True)
    z = (y - mean) / jnp.sqrt(var + 1e-3)
    z = z * params["gamma"] + params["beta"]
    return jnp.tanh(z), y


if __name__ == "__main__":
    # Small, forward-consistent shapes.
    N, IN_DIM, HIDDEN, OUT_DIM, N_HEADS = 8, 16, 32, 16, 4
    ALPHA = 0.2

    key = jax.random.PRNGKey(0)
    kx, kadj, kw, ka1, ka2, kwo, ko1, ko2 = jax.random.split(key, 8)

    x = jax.random.normal(kx, (N, IN_DIM), dtype=jnp.float32)
    adj = (jax.random.uniform(kadj, (N, N)) > 0.5).astype(jnp.float32)
    adj = jnp.minimum(adj + jnp.eye(N, dtype=jnp.float32), 1.0)   # self loops

    # Deterministic xavier-ish parameter init (no checkpoint load).
    params = {
        "w_heads": 0.3 * jax.random.normal(kw, (N_HEADS, IN_DIM, HIDDEN), jnp.float32),
        "a1_heads": 0.3 * jax.random.normal(ka1, (N_HEADS, 1, HIDDEN), jnp.float32),
        "a2_heads": 0.3 * jax.random.normal(ka2, (N_HEADS, 1, HIDDEN), jnp.float32),
        "w_out": 0.1 * jax.random.normal(kwo, (HIDDEN * N_HEADS, OUT_DIM), jnp.float32),
        "a1_out": 0.3 * jax.random.normal(ko1, (1, OUT_DIM), jnp.float32),
        "a2_out": 0.3 * jax.random.normal(ko2, (1, OUT_DIM), jnp.float32),
        "gamma": jnp.ones((1, OUT_DIM), jnp.float32),   # BatchNorm1d weight
        "beta": jnp.zeros((1, OUT_DIM), jnp.float32),   # BatchNorm1d bias
    }

    out, pre_bn = gat_forward(x, adj, params, alpha=ALPHA, return_pre_bn=True)
    out = jax.block_until_ready(out)

    ref_out, ref_pre_bn = gat_reference(x, adj, params, alpha=ALPHA)
    assert out.shape == (N, OUT_DIM)
    # Tight pre-BN / pre-tanh check (catches structural bugs before BatchNorm's
    # small-batch rescaling); remaining slack covers bf16 MXU operands and the
    # EUP approx reciprocal used per the perf guidance.
    assert jnp.allclose(pre_bn, ref_pre_bn, atol=3e-2, rtol=3e-2), \
        "pre-BN mismatch vs reference"
    assert jnp.allclose(out, ref_out, atol=5e-2, rtol=5e-2), \
        "output mismatch vs reference"

    print("KERNEL_OK")
</pallas_src>

<mosaic_0001>
module attributes {stable_mosaic.version = 11 : i64} {
  func.func @_project_kernel(%arg0: i32, %arg1: memref<8x16xf32, #tpu.memory_space<vmem>>, %arg2: memref<4x16x32xf32, #tpu.memory_space<vmem>>, %arg3: memref<4x32x2xf32, #tpu.memory_space<vmem>>, %arg4: memref<4x8x32xbf16, #tpu.memory_space<vmem>>, %arg5: memref<8x4xf32, #tpu.memory_space<vmem>>, %arg6: memref<8x4xf32, #tpu.memory_space<vmem>>) attributes {dimension_semantics = [#tpu.dimension_semantics<parallel>], iteration_bounds = array<i64: 1>, scalar_prefetch = 0 : i64, scratch_operands = 0 : i64, tpu.core_type = #tpu.core_type<tc>, window_params = [{transform_indices = @transform_0, window_bounds = array<i64: 8, 16>}, {pipeline_mode = #tpu.pipeline_mode<synchronous>, transform_indices = @transform_1, window_bounds = array<i64: 4, 16, 32>}, {pipeline_mode = #tpu.pipeline_mode<synchronous>, transform_indices = @transform_2, window_bounds = array<i64: 4, 32, 2>}, {transform_indices = @transform_3, window_bounds = array<i64: 4, 8, 32>}, {transform_indices = @transform_4, window_bounds = array<i64: 8, 4>}, {transform_indices = @transform_5, window_bounds = array<i64: 8, 4>}]} {
    %c0 = arith.constant 0 : index
    %c0_0 = arith.constant 0 : index
    %0 = vector.load %arg1[%c0, %c0_0] : memref<8x16xf32, #tpu.memory_space<vmem>>, vector<8x16xf32>
    %c0_1 = arith.constant 0 : index
    %c0_2 = arith.constant 0 : index
    %c0_3 = arith.constant 0 : index
    %1 = vector.load %arg2[%c0_1, %c0_2, %c0_3] : memref<4x16x32xf32, #tpu.memory_space<vmem>>, vector<1x16x32xf32>
    %2 = vector.shape_cast %1 : vector<1x16x32xf32> to vector<16x32xf32>
    %cst = arith.constant dense<0.000000e+00> : vector<8x32xf32>
    %3 = tpu.matmul %0, %2, %cst {dimension_numbers = #tpu.dot_dimension_numbers<[1], [0], [0], [1], [0, 0, 1, 1], [], []>} : vector<8x16xf32>, vector<16x32xf32>, vector<8x32xf32> -> vector<8x32xf32>
    %4 = arith.truncf %3 : vector<8x32xf32> to vector<8x32xbf16>
    %c0_4 = arith.constant 0 : index
    %c0_5 = arith.constant 0 : index
    %c0_6 = arith.constant 0 : index
    %5 = vector.load %arg4[%c0_4, %c0_5, %c0_6] : memref<4x8x32xbf16, #tpu.memory_space<vmem>>, vector<1x8x32xbf16>
    %6 = vector.shape_cast %5 : vector<1x8x32xbf16> to vector<8x32xbf16>
    %7 = vector.shape_cast %4 : vector<8x32xbf16> to vector<1x8x32xbf16>
    tpu.vector_store %arg4[%c0_4, %c0_5, %c0_6], %7 {strides = array<i32>} : memref<4x8x32xbf16, #tpu.memory_space<vmem>>, vector<1x8x32xbf16>,
    %c0_7 = arith.constant 0 : index
    %c0_8 = arith.constant 0 : index
    %c0_9 = arith.constant 0 : index
    %8 = vector.load %arg3[%c0_7, %c0_8, %c0_9] : memref<4x32x2xf32, #tpu.memory_space<vmem>>, vector<1x32x2xf32>
    %9 = vector.shape_cast %8 : vector<1x32x2xf32> to vector<32x2xf32>
    %cst_10 = arith.constant dense<0.000000e+00> : vector<8x2xf32>
    %10 = tpu.matmul %3, %9, %cst_10 {dimension_numbers = #tpu.dot_dimension_numbers<[1], [0], [0], [1], [0, 0, 1, 1], [], []>} : vector<8x32xf32>, vector<32x2xf32>, vector<8x2xf32> -> vector<8x2xf32>
    %11 = vector.extract_strided_slice %10 {offsets = [0, 0], sizes = [8, 1], strides = [1, 1]} : vector<8x2xf32> to vector<8x1xf32>
    %12 = vector.extract_strided_slice %10 {offsets = [0, 1], sizes = [8, 1], strides = [1, 1]} : vector<8x2xf32> to vector<8x1xf32>
    %c1 = arith.constant 1 : index
    %c0_11 = arith.constant 0 : index
    %c0_12 = arith.constant 0 : index
    %13 = vector.load %arg2[%c1, %c0_11, %c0_12] : memref<4x16x32xf32, #tpu.memory_space<vmem>>, vector<1x16x32xf32>
    %14 = vector.shape_cast %13 : vector<1x16x32xf32> to vector<16x32xf32>
    %cst_13 = arith.constant dense<0.000000e+00> : vector<8x32xf32>
    %15 = tpu.matmul %0, %14, %cst_13 {dimension_numbers = #tpu.dot_dimension_numbers<[1], [0], [0], [1], [0, 0, 1, 1], [], []>} : vector<8x16xf32>, vector<16x32xf32>, vector<8x32xf32> -> vector<8x32xf32>
    %16 = arith.truncf %15 : vector<8x32xf32> to vector<8x32xbf16>
    %c1_14 = arith.constant 1 : index
    %c0_15 = arith.constant 0 : index
    %c0_16 = arith.constant 0 : index
    %17 = vector.load %arg4[%c1_14, %c0_15, %c0_16] : memref<4x8x32xbf16, #tpu.memory_space<vmem>>, vector<1x8x32xbf16>
    %18 = vector.shape_cast %17 : vector<1x8x32xbf16> to vector<8x32xbf16>
    %19 = vector.shape_cast %16 : vector<8x32xbf16> to vector<1x8x32xbf16>
    tpu.vector_store %arg4[%c1_14, %c0_15, %c0_16], %19 {strides = array<i32>} : memref<4x8x32xbf16, #tpu.memory_space<vmem>>, vector<1x8x32xbf16>,
    %c1_17 = arith.constant 1 : index
    %c0_18 = arith.constant 0 : index
    %c0_19 = arith.constant 0 : index
    %20 = vector.load %arg3[%c1_17, %c0_18, %c0_19] : memref<4x32x2xf32, #tpu.memory_space<vmem>>, vector<1x32x2xf32>
    %21 = vector.shape_cast %20 : vector<1x32x2xf32> to vector<32x2xf32>
    %cst_20 = arith.constant dense<0.000000e+00> : vector<8x2xf32>
    %22 = tpu.matmul %15, %21, %cst_20 {dimension_numbers = #tpu.dot_dimension_numbers<[1], [0], [0], [1], [0, 0, 1, 1], [], []>} : vector<8x32xf32>, vector<32x2xf32>, vector<8x2xf32> -> vector<8x2xf32>
    %23 = vector.extract_strided_slice %22 {offsets = [0, 0], sizes = [8, 1], strides = [1, 1]} : vector<8x2xf32> to vector<8x1xf32>
    %24 = vector.extract_strided_slice %22 {offsets = [0, 1], sizes = [8, 1], strides = [1, 1]} : vector<8x2xf32> to vector<8x1xf32>
    %c2 = arith.constant 2 : index
    %c0_21 = arith.constant 0 : index
    %c0_22 = arith.constant 0 : index
    %25 = vector.load %arg2[%c2, %c0_21, %c0_22] : memref<4x16x32xf32, #tpu.memory_space<vmem>>, vector<1x16x32xf32>
    %26 = vector.shape_cast %25 : vector<1x16x32xf32> to vector<16x32xf32>
    %cst_23 = arith.constant dense<0.000000e+00> : vector<8x32xf32>
    %27 = tpu.matmul %0, %26, %cst_23 {dimension_numbers = #tpu.dot_dimension_numbers<[1], [0], [0], [1], [0, 0, 1, 1], [], []>} : vector<8x16xf32>, vector<16x32xf32>, vector<8x32xf32> -> vector<8x32xf32>
    %28 = arith.truncf %27 : vector<8x32xf32> to vector<8x32xbf16>
    %c2_24 = arith.constant 2 : index
    %c0_25 = arith.constant 0 : index
    %c0_26 = arith.constant 0 : index
    %29 = vector.load %arg4[%c2_24, %c0_25, %c0_26] : memref<4x8x32xbf16, #tpu.memory_space<vmem>>, vector<1x8x32xbf16>
    %30 = vector.shape_cast %29 : vector<1x8x32xbf16> to vector<8x32xbf16>
    %31 = vector.shape_cast %28 : vector<8x32xbf16> to vector<1x8x32xbf16>
    tpu.vector_store %arg4[%c2_24, %c0_25, %c0_26], %31 {strides = array<i32>} : memref<4x8x32xbf16, #tpu.memory_space<vmem>>, vector<1x8x32xbf16>,
    %c2_27 = arith.constant 2 : index
    %c0_28 = arith.constant 0 : index
    %c0_29 = arith.constant 0 : index
    %32 = vector.load %arg3[%c2_27, %c0_28, %c0_29] : memref<4x32x2xf32, #tpu.memory_space<vmem>>, vector<1x32x2xf32>
    %33 = vector.shape_cast %32 : vector<1x32x2xf32> to vector<32x2xf32>
    %cst_30 = arith.constant dense<0.000000e+00> : vector<8x2xf32>
    %34 = tpu.matmul %27, %33, %cst_30 {dimension_numbers = #tpu.dot_dimension_numbers<[1], [0], [0], [1], [0, 0, 1, 1], [], []>} : vector<8x32xf32>, vector<32x2xf32>, vector<8x2xf32> -> vector<8x2xf32>
    %35 = vector.extract_strided_slice %34 {offsets = [0, 0], sizes = [8, 1], strides = [1, 1]} : vector<8x2xf32> to vector<8x1xf32>
    %36 = vector.extract_strided_slice %34 {offsets = [0, 1], sizes = [8, 1], strides = [1, 1]} : vector<8x2xf32> to vector<8x1xf32>
    %c3 = arith.constant 3 : index
    %c0_31 = arith.constant 0 : index
    %c0_32 = arith.constant 0 : index
    %37 = vector.load %arg2[%c3, %c0_31, %c0_32] : memref<4x16x32xf32, #tpu.memory_space<vmem>>, vector<1x16x32xf32>
    %38 = vector.shape_cast %37 : vector<1x16x32xf32> to vector<16x32xf32>
    %cst_33 = arith.constant dense<0.000000e+00> : vector<8x32xf32>
    %39 = tpu.matmul %0, %38, %cst_33 {dimension_numbers = #tpu.dot_dimension_numbers<[1], [0], [0], [1], [0, 0, 1, 1], [], []>} : vector<8x16xf32>, vector<16x32xf32>, vector<8x32xf32> -> vector<8x32xf32>
    %40 = arith.truncf %39 : vector<8x32xf32> to vector<8x32xbf16>
    %c3_34 = arith.constant 3 : index
    %c0_35 = arith.constant 0 : index
    %c0_36 = arith.constant 0 : index
    %41 = vector.load %arg4[%c3_34, %c0_35, %c0_36] : memref<4x8x32xbf16, #tpu.memory_space<vmem>>, vector<1x8x32xbf16>
    %42 = vector.shape_cast %41 : vector<1x8x32xbf16> to vector<8x32xbf16>
    %43 = vector.shape_cast %40 : vector<8x32xbf16> to vector<1x8x32xbf16>
    tpu.vector_store %arg4[%c3_34, %c0_35, %c0_36], %43 {strides = array<i32>} : memref<4x8x32xbf16, #tpu.memory_space<vmem>>, vector<1x8x32xbf16>,
    %c3_37 = arith.constant 3 : index
    %c0_38 = arith.constant 0 : index
    %c0_39 = arith.constant 0 : index
    %44 = vector.load %arg3[%c3_37, %c0_38, %c0_39] : memref<4x32x2xf32, #tpu.memory_space<vmem>>, vector<1x32x2xf32>
    %45 = vector.shape_cast %44 : vector<1x32x2xf32> to vector<32x2xf32>
    %cst_40 = arith.constant dense<0.000000e+00> : vector<8x2xf32>
    %46 = tpu.matmul %39, %45, %cst_40 {dimension_numbers = #tpu.dot_dimension_numbers<[1], [0], [0], [1], [0, 0, 1, 1], [], []>} : vector<8x32xf32>, vector<32x2xf32>, vector<8x2xf32> -> vector<8x2xf32>
    %47 = vector.extract_strided_slice %46 {offsets = [0, 0], sizes = [8, 1], strides = [1, 1]} : vector<8x2xf32> to vector<8x1xf32>
    %48 = vector.extract_strided_slice %46 {offsets = [0, 1], sizes = [8, 1], strides = [1, 1]} : vector<8x2xf32> to vector<8x1xf32>
    %49 = tpu.concatenate %11, %23, %35, %47 in 1 : vector<8x1xf32>, vector<8x1xf32>, vector<8x1xf32>, vector<8x1xf32> -> vector<8x4xf32>
    %c0_41 = arith.constant 0 : index
    %c0_42 = arith.constant 0 : index
    %50 = vector.load %arg5[%c0_41, %c0_42] : memref<8x4xf32, #tpu.memory_space<vmem>>, vector<8x4xf32>
    tpu.vector_store %arg5[%c0_41, %c0_42], %49 {strides = array<i32>} : memref<8x4xf32, #tpu.memory_space<vmem>>, vector<8x4xf32>,
    %51 = tpu.concatenate %12, %24, %36, %48 in 1 : vector<8x1xf32>, vector<8x1xf32>, vector<8x1xf32>, vector<8x1xf32> -> vector<8x4xf32>
    %c0_43 = arith.constant 0 : index
    %c0_44 = arith.constant 0 : index
    %52 = vector.load %arg6[%c0_43, %c0_44] : memref<8x4xf32, #tpu.memory_space<vmem>>, vector<8x4xf32>
    tpu.vector_store %arg6[%c0_43, %c0_44], %51 {strides = array<i32>} : memref<8x4xf32, #tpu.memory_space<vmem>>, vector<8x4xf32>,
    return
  }
  func.func @transform_0(%arg0: i32) -> (i32, i32) {
    %c0_i32 = arith.constant 0 : i32
    %c0_i32_0 = arith.constant 0 : i32
    return %arg0, %c0_i32 : i32, i32
  }
  func.func @transform_1(%arg0: i32) -> (i32, i32, i32) {
    %c0_i32 = arith.constant 0 : i32
    %c0_i32_0 = arith.constant 0 : i32
    %c0_i32_1 = arith.constant 0 : i32
    %c0_i32_2 = arith.constant 0 : i32
    return %c0_i32, %c0_i32_0, %c0_i32_1 : i32, i32, i32
  }
  func.func @transform_2(%arg0: i32) -> (i32, i32, i32) {
    %c0_i32 = arith.constant 0 : i32
    %c0_i32_0 = arith.constant 0 : i32
    %c0_i32_1 = arith.constant 0 : i32
    %c0_i32_2 = arith.constant 0 : i32
    return %c0_i32, %c0_i32_0, %c0_i32_1 : i32, i32, i32
  }
  func.func @transform_3(%arg0: i32) -> (i32, i32, i32) {
    %c0_i32 = arith.constant 0 : i32
    %c0_i32_0 = arith.constant 0 : i32
    %c0_i32_1 = arith.constant 0 : i32
    return %c0_i32, %arg0, %c0_i32_0 : i32, i32, i32
  }
  func.func @transform_4(%arg0: i32) -> (i32, i32) {
    %c0_i32 = arith.constant 0 : i32
    %c0_i32_0 = arith.constant 0 : i32
    return %arg0, %c0_i32 : i32, i32
  }
  func.func @transform_5(%arg0: i32) -> (i32, i32) {
    %c0_i32 = arith.constant 0 : i32
    %c0_i32_0 = arith.constant 0 : i32
    return %arg0, %c0_i32 : i32, i32
  }
}

</mosaic_0001>

<bundles_post_ra>
// kernel: tpu_custom_call.1
= control target key start
LH: loop header
LB: loop body
LE: loop exit
PB: predicated region body
PF: predicated region fallthrough
CT: control target
= control target key end

     0   :  { %v896_v3 = vmov 0.0|0.0   ;;  %vm897_vm0 = vmmov 0   ;;  %v898_v8 = vmov 0.0   ;;  %vm21_vm1 = vcmask 130048   ;;  %s1071_s0 = inlined_call_operand.vmem [shape: f32[8,16], index: 0, kind: input, shape index: {}]   ;;  %s1072_s1 = inlined_call_operand.vmem [shape: f32[4,16,32], index: 1, kind: input, shape index: {}]   ;;  %s1073_s2 = inlined_call_operand.vmem [shape: f32[4,32,2], index: 2, kind: input, shape index: {}]   ;;  %s1074_s3 = inlined_call_operand.hbm [shape: bf16[4,8,32], index: 3, kind: output, shape index: {0}]   ;;  %s1075_s4 = inlined_call_operand.vmem [shape: f32[8,4], index: 4, kind: output, shape index: {1}]   ;;  %s1076_s5 = inlined_call_operand.vmem [shape: f32[8,4], index: 5, kind: output, shape index: {2}]  }
   0x1   :  { %v19_v0 = vld [vmem:[%s1072_s1] sm:$0xff]  ;;  %v20_v1 = vld [vmem:[%s1072_s1 + $0x8] sm:$0xff]  ;;  %v698_v2 = vld [vmem:[%s1072_s1 + $0x10] sm:$0xff]  ;;  %826 = vmatprep.subr.bf16.mxu1 %v896_v3  ;;  %835 = vmatprep.subr.bf16.mxu0 %v896_v3 }
   0x2   :  { %v827_v4 = vpack.c.bf16 %v20_v1, %v19_v0  ;;  %v699_v5 = vld [vmem:[%s1072_s1 + $0x18] sm:$0xff]  ;;  %v98_v6 = vld [vmem:[%s1073_s2] sm:$0xff]  ;;  %758 = vmatprep.mubr.msk.f32.mxu1 %vm897_vm0, %v898_v8  ;;  %776 = vmatprep.mubr.msk.f32.mxu0 %vm897_vm0, %v898_v8  ;;  %v99_v9 = vld [vmem:[%s1073_s2 + $0x8] sm:$0xff] }
   0x3   :  { %v836_v7 = vpack.c.bf16 %v699_v5, %v698_v2  ;;  %v701_v10 = vld [vmem:[%s1073_s2 + $0x20] sm:$0xff]  ;;  %v702_v11 = vld [vmem:[%s1073_s2 + $0x28] sm:$0xff]  ;;  %v830_v13 = vpack.c.bf16 %v99_v9, %v98_v6  ;;  %v100_v15 = vld [vmem:[%s1073_s2 + $0x10] sm:$0xff] }
   0x4   :  { %828 = vmatpush3.bf16.msra.mxu1 %v827_v4  ;;  %v18_v12 = vld [vmem:[%s1071_s0] sm:$0xff]  ;;  %v839_v14 = vpack.c.bf16 %v702_v11, %v701_v10  ;;  %v101_v16 = vld [vmem:[%s1073_s2 + $0x18] sm:$0xff] }
   0x5   :  { %837 = vmatpush3.bf16.msra.mxu0 %v836_v7  ;;  %829 = vmatprep.subr.bf16.mxu1 %v896_v3 }
   0x6   :  { %11 = vsyncpa [#allocation3], 0  ;;  %838 = vmatprep.subr.bf16.mxu0 %v896_v3  ;;  %v703_v17 = vld [vmem:[%s1073_s2 + $0x30] sm:$0xff]  ;;  %v704_v18 = vld [vmem:[%s1073_s2 + $0x38] sm:$0xff]  ;;  %v833_v19 = vpack.c.bf16 %v101_v16, %v100_v15  ;;  %vm102_vm2 = vcmask 261120   ;;  %vm96_vm3 = vcmask 257024  }
   0x7   :  { %759 = vmatmul.mubr.msk.f32.vlgmr.msra.gmra.mrb[0].mxu1 %vm21_vm1, %v18_v12  ;;  %v842_v20 = vpack.c.bf16 %v704_v18, %v703_v17  ;;  %v706_v21 = vld [vmem:[%s1072_s1 + $0x20] sm:$0xff]  ;;  %v707_v22 = vld [vmem:[%s1072_s1 + $0x28] sm:$0xff]  ;;  %v714_v23 = vld [vmem:[%s1072_s1 + $0x30] sm:$0xff]  ;;  %s899_s16 = smov 1   ;;  %s900_s0 = smov 127  }
   0x8   :  { %777 = vmatmul.mubr.msk.f32.vlgmr.msra.gmra.mrb[0].mxu0 %vm21_vm1, %v18_v12  ;;  %831 = vmatpush3.bf16.msra.mxu1 %v830_v13  ;;  %v715_v24 = vld [vmem:[%s1072_s1 + $0x38] sm:$0xff]  ;;  %v845_v25 = vpack.c.bf16 %v707_v22, %v706_v21  ;;  %v709_v27 = vld [vmem:[%s1073_s2 + $0x40] sm:$0xff]  ;;  %v710_v28 = vld [vmem:[%s1073_s2 + $0x48] sm:$0xff] }
   0x9   :  { %840 = vmatpush3.bf16.msra.mxu0 %v839_v14  ;;  %832 = vmatprep.subr.bf16.mxu1 %v896_v3  ;;  %v854_v26 = vpack.c.bf16 %v715_v24, %v714_v23  ;;  %v717_v30 = vld [vmem:[%s1073_s2 + $0x60] sm:$0xff]  ;;  %v718_v31 = vld [vmem:[%s1073_s2 + $0x68] sm:$0xff]  ;;  %v848_v37 = vpack.c.bf16 %v710_v28, %v709_v27  ;;  %v711_v39 = vld [vmem:[%s1073_s2 + $0x50] sm:$0xff] }
   0xa   :  { %841 = vmatprep.subr.bf16.mxu0 %v896_v3  ;;  %769 = vmatprep.mubr.msk.f32.mxu1 %vm897_vm0, %v898_v8  ;;  %v857_v38 = vpack.c.bf16 %v718_v31, %v717_v30  ;;  %v712_v40 = vld [vmem:[%s1073_s2 + $0x58] sm:$0xff]  ;;  %v719_v42 = vld [vmem:[%s1073_s2 + $0x70] sm:$0xff] }
   0xb   :  { %787 = vmatprep.mubr.msk.f32.mxu0 %vm897_vm0, %v898_v8  ;;  %v851_v41 = vpack.c.bf16 %v712_v40, %v711_v39  ;;  %v720_v43 = vld [vmem:[%s1073_s2 + $0x78] sm:$0xff]  ;;  %s901_s2 = smov [#allocation2]  }
   0xc   :  { %834 = vmatpush3.bf16.msra.mxu1 %v833_v19  ;;  %v860_v44 = vpack.c.bf16 %v720_v43, %v719_v42  ;;  %s677_s17 = sshll.u32 %s901_s2, 4  ;;  %s678_s17 = int_to_ptr.vmem [resolvable:$true] %s677_s17 }
   0xd   :  { %843 = vmatpush3.bf16.msra.mxu0 %v842_v20  ;;  %844 = vmatprep.subr.bf16.mxu1 %v896_v3  ;;  %s872_s18 = scalar_lea.vmem %s678_s17, 256  ;;  %p877_p1 = scmp.lt.s32.totalorder %s678_s17, %s678_s17 }
   0xe   :  { %853 = vmatprep.subr.bf16.mxu0 %v896_v3  ;;  %p873_p0 = scmp.ne.s32.totalorder %s678_s17, %s872_s18  ;;  %p878_p2 = scmp.lt.s32.totalorder %s872_s18, %s872_s18 }
  0x10   :  { %p879_p3 = por %p878_p2, %p877_p1 }
  0x12   :  { %p880_p4 = pnand %p879_p3, %p873_p0 }
  0xda   :  { %v91_v29 = vpop.f32.mrb[0].mxu1 }
  0xdb   :  { %v95_v32 = vpack.c.bf16 %v91_v29, %v91_v29  ;;  %v245_v33 = vpop.f32.mrb[0].mxu0  ;;  %v760_v34 = vpop.f32.mrb[1].mxu1  ;;  %770 = vmatmul.mubr.msk.f32.vlgmr.msra.gmra.mrb[2].mxu1 %vm102_vm2, %v91_v29 }
  0xdc   :  { %v249_v35 = vpack.c.bf16 %v245_v33, %v245_v33  ;;  %788 = vmatmul.mubr.msk.f32.vlgmr.msra.gmra.mrb[2].mxu0 %vm102_vm2, %v245_v33  ;;  %846 = vmatpush3.bf16.msra.mxu1 %v845_v25  ;;  %v778_v36 = vpop.f32.mrb[1].mxu0 }
  0xdd   :  { %97 = vst.msk [vmem:[#allocation2] sm:$0xf] %vm96_vm3, %v95_v32  ;;  %855 = vmatpush3.bf16.msra.mxu0 %v854_v26  ;;  %794 = vmatprep.mubr.msk.f32.mxu1 %vm897_vm0, %v898_v8 }
  0xde   :  { %251 = vst.msk [vmem:[#allocation2 + $0x4] sm:$0xf] %vm96_vm3, %v249_v35  ;;  %812 = vmatprep.mubr.msk.f32.mxu0 %vm897_vm0, %v898_v8  ;;  %847 = vmatprep.subr.bf16.mxu1 %v896_v3 }
  0xdf   :  { %795 = vmatmul.mubr.msk.f32.vlgmr.msra.gmra.mrb[4].mxu1 %vm21_vm1, %v18_v12  ;;  %856 = vmatprep.subr.bf16.mxu0 %v896_v3 }
  0xe0   :  { %813 = vmatmul.mubr.msk.f32.vlgmr.msra.gmra.mrb[4].mxu0 %vm21_vm1, %v18_v12  ;;  %849 = vmatpush3.bf16.msra.mxu1 %v848_v37 }
  0xe1   :  { %858 = vmatpush3.bf16.msra.mxu0 %v857_v38  ;;  %850 = vmatprep.subr.bf16.mxu1 %v896_v3 }
  0xe2   :  { %859 = vmatprep.subr.bf16.mxu0 %v896_v3  ;;  %805 = vmatprep.mubr.msk.f32.mxu1 %vm897_vm0, %v898_v8 }
  0xe3   :  { %823 = vmatprep.mubr.msk.f32.mxu0 %vm897_vm0, %v898_v8 }
  0xe4   :  { %852 = vmatpush3.bf16.msra.mxu1 %v851_v41 }
  0xe5   :  { %861 = vmatpush3.bf16.msra.mxu0 %v860_v44 }
 0x1ae   :  { %v172_v45 = vpop.f32.mrb[2].mxu1 }
 0x1af   :  { %v326_v46 = vpop.f32.mrb[2].mxu0  ;;  %v771_v47 = vpop.f32.mrb[3].mxu1 }
 0x1b0   :  { %639 = vrot.lane.b32.xlu0 %v326_v46, %s899_s16  ;;  %v789_v48 = vpop.f32.mrb[3].mxu0 }
 0x1b2   :  { %v399_v49 = vpop.f32.mrb[4].mxu1 }
 0x1b3   :  { %v403_v50 = vpack.c.bf16 %v399_v49, %v399_v49  ;;  %v553_v51 = vpop.f32.mrb[4].mxu0  ;;  %v796_v52 = vpop.f32.mrb[5].mxu1  ;;  %806 = vmatmul.mubr.msk.f32.vlgmr.msra.gmra.mrb[6].mxu1 %vm102_vm2, %v399_v49 }
 0x1b4   :  { %v557_v53 = vpack.c.bf16 %v553_v51, %v553_v51  ;;  %659 = vrot.lane.b32.xlu0 %v172_v45, %s900_s0  ;;  %824 = vmatmul.mubr.msk.f32.vlgmr.msra.gmra.mrb[6].mxu0 %vm102_vm2, %v553_v51  ;;  %v814_v54 = vpop.f32.mrb[5].mxu0 }
 0x1b5   :  { %405 = vst.msk [vmem:[#allocation2 + $0x8] sm:$0xf] %vm96_vm3, %v403_v50 }
 0x1b6   :  { %559 = vst.msk [vmem:[#allocation2 + $0xc] sm:$0xf] %vm96_vm3, %v557_v53 }
 0x1b7   :  { %883 = shalt.err (!%p880_p4)
}
 0x1b8   :  { %s884_s21 = scalar_lea.hbm %s1074_s3, 256 }
 0x1b9   :  { %p885_p5 = scmp.ne.s32.totalorder %s1074_s3, %s884_s21  ;;  %p888_p6 = scmp.lt.u32.totalorder %s884_s21, %s1074_s3 }
 0x1bb   :  { %p890_p7 = pnand %p888_p6, %p885_p5 }
 0x1bd   :  { %893 = shalt.err (!%p890_p7)
}
 0x1be   :  { %s902_s26 = smov 64   ;;  %s903_s27 = smov 4   ;;  %vm650_vm4 = vcmask 7168   ;;  %vm652_vm5 = vcmask 15360   ;;  %vm654_vm6 = vcmask 23552   ;;  %vm656_vm7 = vcmask 31744  }
 0x1bf   :  { %683 = dma.vmem_to_hbm [thread:$0]  %s678_s17, 256, %s1074_s3, [#allocation3], %s902_s26, %s902_s26, %s903_s27  }
 0x1c0   :  { %s904_s30 = smov 2   ;;  %s905_s6 = smov 3  }
 0x222   :  { %v640_v59 = vpop.permute.xlu0 %639 }
 0x223   :  { %v651_v61 = vsel %vm650_vm4, %v172_v45, %v640_v59 }
 0x226   :  { %v660_v60 = vpop.permute.xlu0 %659 }
 0x227   :  { %v668_v3 = vsel %vm650_vm4, %v660_v60, %v326_v46 }
 0x286   :  { %v480_v55 = vpop.f32.mrb[6].mxu1 }
 0x287   :  { %v634_v56 = vpop.f32.mrb[6].mxu0  ;;  %643 = vrot.lane.b32.xlu1 %v480_v55, %s904_s30  ;;  %v807_v57 = vpop.f32.mrb[7].mxu1 }
 0x288   :  { %647 = vrot.lane.b32.xlu0 %v634_v56, %s905_s6  ;;  %v825_v58 = vpop.f32.mrb[7].mxu0 }
 0x28b   :  { %662 = vrot.lane.b32.xlu1 %v480_v55, %s899_s16 }
 0x28f   :  { %665 = vrot.lane.b32.xlu1 %v634_v56, %s904_s30 }
 0x2f9   :  { %v644_v62 = vpop.permute.xlu1 %643 }
 0x2fa   :  { %v653_v63 = vsel %vm652_vm5, %v651_v61, %v644_v62  ;;  %v648_v0 = vpop.permute.xlu0 %647 }
 0x2fb   :  { %v655_v1 = vsel %vm654_vm6, %v653_v63, %v648_v0 }
 0x2fc   :  { %657 = vst.msk [vmem:[%s1075_s4] sm:$0xff] %vm656_vm7, %v655_v1 }
 0x2fd   :  { %v663_v2 = vpop.permute.xlu1 %662 }
 0x2fe   :  { %v669_v4 = vsel %vm652_vm5, %v668_v3, %v663_v2 }
 0x301   :  { %v666_v5 = vpop.permute.xlu1 %665 }
 0x302   :  { %v670_v6 = vsel %vm654_vm6, %v669_v4, %v666_v5 }
 0x303   :  { %671 = vst.msk [vmem:[%s1076_s5] sm:$0xff] %vm656_vm7, %v670_v6 }
 0x304   :  { %894 = dma.done.wait [#allocation3], 256  }
 0x305   :  { %895 = vsyncadd [#allocation3], 4294967040 }
 0x306   :  { %695 = vsyncpa [#allocation3], 1 }

</bundles_post_ra>
